<compile_context>
chip_gen: v6e
topology: v6e:2x2x1
jax: 0.10.0
libtpu: 0.0.40
codegen_flags: <defaults>
</compile_context>

<pallas_src>
import jax
import jax.numpy as jnp
from jax import lax
from jax.experimental import pallas as pl
from jax.experimental.pallas import tpu as pltpu
import numpy as np

_OUT_LANES = 128   # single lane-dense output slab
_LOGITS_OFF = 8    # flattened logits live at lanes [8, 8 + B*S)


def make_forgetting_kernel(beta, B, M, N, S, D):
    beta = float(beta)
    inv_M = 1.0 / M
    inv_B = 1.0 / B
    inv_BMN = 1.0 / (B * M * N)

    def kernel(signer_ref, family_t_ref, labels_ref, wb_ref, out_ref):
        signer = signer_ref[...]              # (B, M, D) f32, VMEM
        family_t = family_t_ref[...]          # (B, D, N) f32, VMEM (pre-transposed)
        w = wb_ref[0:S, :]                    # (S, D)  weight rows
        b = wb_ref[S:S + 1, 0:S]              # (1, S)  bias packed in last row

        # ---- signer representation: mean over signer prompts ----
        signer_repr = jnp.sum(signer, axis=1) * inv_M                 # (B, D)

        # ---- linear signer classifier (GRL is identity in forward) ----
        # S=4, D=32: far below an MXU tile, stay on VPU (broadcast multiply)
        # + lane reduce.  At production D>=128 this would move to the MXU.
        prod = signer_repr[:, None, :] * w[None, :, :]                # (B, S, D)
        logits = jnp.sum(prod, axis=-1) + b                           # (B, S)

        # ---- cross-entropy (mean over batch); labels are SMEM scalars ----
        col = lax.broadcasted_iota(jnp.int32, (B, S), 1)
        row = lax.broadcasted_iota(jnp.int32, (B, S), 0)
        lab = jnp.full((B, S), -1, dtype=jnp.int32)
        for b_idx in range(B):                                        # static B
            lab = jnp.where(row == b_idx, labels_ref[b_idx], lab)
        onehot = col == lab                                           # (B, S)
        m = jnp.max(logits, axis=-1, keepdims=True)                   # (B, 1)
        lse = m + jnp.log(jnp.sum(jnp.exp(logits - m),
                                  axis=-1, keepdims=True))            # (B, 1)
        picked = jnp.sum(jnp.where(onehot, logits, 0.0),
                         axis=-1, keepdims=True)                      # (B, 1)
        ce = lse - picked                                             # (B, 1)
        forgetting = jnp.sum(ce, axis=0, keepdims=True) * inv_B       # (1, 1)

        # ---- decorrelation: normalize rows first (EUP reciprocal), then a
        #      single cos matmul + square.  family is already (B, D, N) so the
        #      dot contracts lanes(lhs) x sublanes(rhs): no XLU transpose.
        #      sn.fn_t == dot / ((||s||+eps)*(||f||+eps)), as in the reference.
        inv_ns = pl.reciprocal(
            jnp.sqrt(jnp.sum(signer * signer, axis=-1, keepdims=True)) + 1e-8,
            approx=False)                                             # (B, M, 1)
        inv_nf = pl.reciprocal(
            jnp.sqrt(jnp.sum(family_t * family_t, axis=1, keepdims=True)) + 1e-8,
            approx=False)                                             # (B, 1, N)
        sn = signer * inv_ns                                          # (B, M, D)
        fn_t = family_t * inv_nf                                      # (B, D, N)
        # TODO(synk): at production M,N switch to the Gram form
        # <Sn^T Sn, Fn^T Fn> to avoid materializing the (B, M, N) intermediate.
        cos = jnp.einsum('bmd,bdn->bmn', sn, fn_t,
                         preferred_element_type=jnp.float32)          # (B, M, N)
        c2 = cos * cos
        acc = jnp.sum(jnp.sum(c2, axis=2), axis=1, keepdims=True)     # (B, 1)
        decorr = jnp.sum(acc, axis=0, keepdims=True) * inv_BMN        # (1, 1)

        total = forgetting + beta * decorr                            # (1, 1)

        # ---- pack losses + logits into ONE lane-dense (1, 128) slab ----
        lane = lax.broadcasted_iota(jnp.int32, (1, _OUT_LANES), 1)
        slab = (jnp.where(lane == 0, forgetting, 0.0)
                + jnp.where(lane == 1, decorr, 0.0)
                + jnp.where(lane == 2, total, 0.0))                   # (1, 128)
        for b_idx in range(B):
            for s_idx in range(S):
                val = logits[b_idx:b_idx + 1, s_idx:s_idx + 1]        # (1, 1)
                tgt = _LOGITS_OFF + b_idx * S + s_idx
                slab = jnp.where(lane == tgt, val, slab)
        out_ref[...] = slab                                           # single unmasked store

    return kernel


def prompt_forgetting_forward(signer_prompts, family_prompts, signer_labels,
                              weight, bias, *, beta=0.1):
    """Pallas equivalent of PromptForgettingModule.forward (forward pass only)."""
    signer_prompts = signer_prompts.astype(jnp.float32)
    family_prompts = family_prompts.astype(jnp.float32)
    B, M, D = signer_prompts.shape
    N = family_prompts.shape[1]
    S = weight.shape[0]
    assert weight.shape == (S, D)
    assert S <= D, "bias row packing assumes num_signers <= prompt_dim"
    assert _LOGITS_OFF + B * S <= _OUT_LANES

    # Wrapper-side layout plumbing (cuts DMA count / removes in-kernel transpose):
    family_t = jnp.swapaxes(family_prompts, 1, 2)                 # (B, D, N)
    labels = signer_labels.astype(jnp.int32).reshape(B)           # SMEM scalars
    bias_row = jnp.zeros((1, D), jnp.float32).at[0, :S].set(
        bias.astype(jnp.float32))
    wb = jnp.concatenate([weight.astype(jnp.float32), bias_row], axis=0)  # (S+1, D)

    def full_spec(shape):
        return pl.BlockSpec(shape, lambda: (0,) * len(shape))

    flops = 2 * B * M * N * D + 2 * B * S * D + 3 * B * (M + N) * D
    transcendentals = 2 * B * (M + N) + B * S + B
    bytes_accessed = 4 * (B * M * D + B * N * D + (S + 1) * D + B + _OUT_LANES)

    slab = pl.pallas_call(
        make_forgetting_kernel(beta, B, M, N, S, D),
        out_shape=jax.ShapeDtypeStruct((1, _OUT_LANES), jnp.float32),
        in_specs=[
            full_spec((B, M, D)),                                   # signer prompts
            full_spec((B, D, N)),                                   # family (pre-transposed)
            pl.BlockSpec(memory_space=pltpu.MemorySpace.SMEM),      # labels -> SMEM
            full_spec((S + 1, D)),                                  # weight + bias slab
        ],
        out_specs=full_spec((1, _OUT_LANES)),
        cost_estimate=pl.CostEstimate(
            flops=flops, transcendentals=transcendentals,
            bytes_accessed=bytes_accessed),
    )(signer_prompts, family_t, labels, wb)

    logits = slab[0, _LOGITS_OFF:_LOGITS_OFF + B * S].reshape(B, S)
    return {
        'signer_logits': logits,
        'forgetting_loss': slab[0, 0],
        'decorrelation_loss': slab[0, 1],
        'total_forgetting_loss': slab[0, 2],
    }


def reference_forward(signer_prompts, family_prompts, signer_labels,
                      weight, bias, *, beta=0.1):
    """Pure-JAX reference mirroring the PyTorch module."""
    signer_repr = signer_prompts.mean(axis=1)
    logits = signer_repr @ weight.T + bias
    logp = jax.nn.log_softmax(logits, axis=-1)
    ce = -jnp.take_along_axis(logp, signer_labels[:, None], axis=1).mean()
    dots = jnp.einsum('bmd,bnd->bmn', signer_prompts, family_prompts)
    ns = jnp.linalg.norm(signer_prompts, axis=-1, keepdims=True) + 1e-8
    nf = jnp.linalg.norm(family_prompts, axis=-1, keepdims=True) + 1e-8
    norms = ns @ jnp.swapaxes(nf, 1, 2)
    cos = dots / norms
    dec = jnp.mean(cos ** 2)
    return logits, ce, dec, ce + beta * dec


if __name__ == "__main__":
    # Small, deterministic problem sizes.
    B, M_signer, M_family = 2, 8, 6
    prompt_dim, num_signers = 32, 4
    beta = 0.1

    key = jax.random.PRNGKey(0)
    k_sp, k_fp, k_lb, k_w, k_b = jax.random.split(key, 5)

    signer_prompts = jax.random.normal(k_sp, (B, M_signer, prompt_dim),
                                       dtype=jnp.float32)
    family_prompts = jax.random.normal(k_fp, (B, M_family, prompt_dim),
                                       dtype=jnp.float32)
    signer_labels = jax.random.randint(k_lb, (B,), 0, num_signers,
                                       dtype=jnp.int32)

    # Deterministic nn.Linear(prompt_dim, num_signers)-shaped parameters.
    bound = 1.0 / np.sqrt(prompt_dim)
    weight = jax.random.uniform(k_w, (num_signers, prompt_dim),
                                minval=-bound, maxval=bound,
                                dtype=jnp.float32)
    bias = jax.random.uniform(k_b, (num_signers,),
                              minval=-bound, maxval=bound, dtype=jnp.float32)

    out = prompt_forgetting_forward(signer_prompts, family_prompts,
                                    signer_labels, weight, bias, beta=beta)
    out = jax.tree_util.tree_map(jax.block_until_ready, out)

    ref_logits, ref_ce, ref_dec, ref_total = reference_forward(
        signer_prompts, family_prompts, signer_labels, weight, bias, beta=beta)

    np.testing.assert_allclose(np.asarray(out['signer_logits']),
                               np.asarray(ref_logits), rtol=1e-5, atol=1e-5)
    np.testing.assert_allclose(float(out['forgetting_loss']),
                               float(ref_ce), rtol=1e-5, atol=1e-5)
    np.testing.assert_allclose(float(out['decorrelation_loss']),
                               float(ref_dec), rtol=1e-5, atol=1e-5)
    np.testing.assert_allclose(float(out['total_forgetting_loss']),
                               float(ref_total), rtol=1e-5, atol=1e-5)

    print("KERNEL_OK")
</pallas_src>

<mosaic_0001>
module attributes {stable_mosaic.version = 11 : i64} {
  func.func @kernel(%arg0: memref<2x8x32xf32, #tpu.memory_space<vmem>>, %arg1: memref<2x32x6xf32, #tpu.memory_space<vmem>>, %arg2: memref<2xi32, #tpu.memory_space<smem>>, %arg3: memref<5x32xf32, #tpu.memory_space<vmem>>, %arg4: memref<1x128xf32, #tpu.memory_space<vmem>>) attributes {dimension_semantics = [], scalar_prefetch = 0 : i64, scratch_operands = 0 : i64, tpu.core_type = #tpu.core_type<tc>} {
    %c0 = arith.constant 0 : index
    %c0_0 = arith.constant 0 : index
    %c0_1 = arith.constant 0 : index
    %0 = vector.load %arg0[%c0, %c0_0, %c0_1] : memref<2x8x32xf32, #tpu.memory_space<vmem>>, vector<2x8x32xf32>
    %c0_2 = arith.constant 0 : index
    %c0_3 = arith.constant 0 : index
    %c0_4 = arith.constant 0 : index
    %1 = vector.load %arg1[%c0_2, %c0_3, %c0_4] : memref<2x32x6xf32, #tpu.memory_space<vmem>>, vector<2x32x6xf32>
    %c0_5 = arith.constant 0 : index
    %c0_6 = arith.constant 0 : index
    %2 = vector.load %arg3[%c0_5, %c0_6] : memref<5x32xf32, #tpu.memory_space<vmem>>, vector<4x32xf32>
    %c4 = arith.constant 4 : index
    %c0_7 = arith.constant 0 : index
    %3 = vector.load %arg3[%c4, %c0_7] : memref<5x32xf32, #tpu.memory_space<vmem>>, vector<1x4xf32>
    %cst = arith.constant dense<0.000000e+00> : vector<2x32xf32>
    %4 = vector.multi_reduction <add>, %0, %cst [1] : vector<2x8x32xf32> to vector<2x32xf32>
    %cst_8 = arith.constant 1.250000e-01 : f32
    %5 = vector.broadcast %cst_8 : f32 to vector<2x32xf32>
    %6 = arith.mulf %4, %5 : vector<2x32xf32>
    %7 = vector.shape_cast %6 : vector<2x32xf32> to vector<2x1x32xf32>
    %8 = vector.shape_cast %2 : vector<4x32xf32> to vector<1x4x32xf32>
    %9 = vector.broadcast %7 : vector<2x1x32xf32> to vector<2x4x32xf32>
    %10 = vector.broadcast %8 : vector<1x4x32xf32> to vector<2x4x32xf32>
    %11 = arith.mulf %9, %10 : vector<2x4x32xf32>
    %cst_9 = arith.constant dense<0.000000e+00> : vector<2x4xf32>
    %12 = vector.multi_reduction <add>, %11, %cst_9 [2] : vector<2x4x32xf32> to vector<2x4xf32>
    %13 = vector.broadcast %3 : vector<1x4xf32> to vector<2x4xf32>
    %14 = arith.addf %12, %13 : vector<2x4xf32>
    %15 = tpu.iota {dimensions = array<i32: 1>} : vector<2x4xi32>
    %16 = tpu.iota {dimensions = array<i32: 0>} : vector<2x4xi32>
    %c-1_i32 = arith.constant -1 : i32
    %17 = vector.broadcast %c-1_i32 : i32 to vector<2x4xi32>
    %c0_i32 = arith.constant 0 : i32
    %18 = vector.broadcast %c0_i32 : i32 to vector<2x4xi32>
    %19 = arith.cmpi eq, %16, %18 : vector<2x4xi32>
    %c0_10 = arith.constant 0 : index
    %20 = memref.load %arg2[%c0_10] : memref<2xi32, #tpu.memory_space<smem>>
    %21 = vector.broadcast %20 : i32 to vector<2x4xi32>
    %22 = arith.select %19, %21, %17 : vector<2x4xi1>, vector<2x4xi32>
    %c1_i32 = arith.constant 1 : i32
    %23 = vector.broadcast %c1_i32 : i32 to vector<2x4xi32>
    %24 = arith.cmpi eq, %16, %23 : vector<2x4xi32>
    %c1 = arith.constant 1 : index
    %25 = memref.load %arg2[%c1] : memref<2xi32, #tpu.memory_space<smem>>
    %26 = vector.broadcast %25 : i32 to vector<2x4xi32>
    %27 = arith.select %24, %26, %22 : vector<2x4xi1>, vector<2x4xi32>
    %28 = arith.cmpi eq, %15, %27 : vector<2x4xi32>
    %cst_11 = arith.constant dense<0xFF800000> : vector<2xf32>
    %29 = vector.multi_reduction <maximumf>, %14, %cst_11 [1] : vector<2x4xf32> to vector<2xf32>
    %30 = vector.shape_cast %29 : vector<2xf32> to vector<2x1xf32>
    %31 = vector.broadcast %30 : vector<2x1xf32> to vector<2x4xf32>
    %32 = arith.subf %14, %31 : vector<2x4xf32>
    %33 = math.exp %32 : vector<2x4xf32>
    %cst_12 = arith.constant dense<0.000000e+00> : vector<2xf32>
    %34 = vector.multi_reduction <add>, %33, %cst_12 [1] : vector<2x4xf32> to vector<2xf32>
    %35 = vector.shape_cast %34 : vector<2xf32> to vector<2x1xf32>
    %36 = math.log %35 : vector<2x1xf32>
    %37 = arith.addf %30, %36 : vector<2x1xf32>
    %cst_13 = arith.constant 0.000000e+00 : f32
    %38 = vector.broadcast %cst_13 : f32 to vector<2x4xf32>
    %39 = arith.select %28, %14, %38 : vector<2x4xi1>, vector<2x4xf32>
    %cst_14 = arith.constant dense<0.000000e+00> : vector<2xf32>
    %40 = vector.multi_reduction <add>, %39, %cst_14 [1] : vector<2x4xf32> to vector<2xf32>
    %41 = vector.shape_cast %40 : vector<2xf32> to vector<2x1xf32>
    %42 = arith.subf %37, %41 : vector<2x1xf32>
    %cst_15 = arith.constant dense<0.000000e+00> : vector<1xf32>
    %43 = vector.multi_reduction <add>, %42, %cst_15 [0] : vector<2x1xf32> to vector<1xf32>
    %44 = vector.shape_cast %43 : vector<1xf32> to vector<1x1xf32>
    %cst_16 = arith.constant 5.000000e-01 : f32
    %45 = vector.broadcast %cst_16 : f32 to vector<1x1xf32>
    %46 = arith.mulf %44, %45 : vector<1x1xf32>
    %47 = arith.mulf %0, %0 : vector<2x8x32xf32>
    %cst_17 = arith.constant dense<0.000000e+00> : vector<2x8xf32>
    %48 = vector.multi_reduction <add>, %47, %cst_17 [2] : vector<2x8x32xf32> to vector<2x8xf32>
    %49 = vector.shape_cast %48 : vector<2x8xf32> to vector<2x8x1xf32>
    %50 = math.sqrt %49 : vector<2x8x1xf32>
    %cst_18 = arith.constant 9.99999993E-9 : f32
    %51 = vector.broadcast %cst_18 : f32 to vector<2x8x1xf32>
    %52 = arith.addf %50, %51 : vector<2x8x1xf32>
    %53 = tpu.reciprocal %52 : vector<2x8x1xf32> -> vector<2x8x1xf32>
    %54 = arith.mulf %1, %1 : vector<2x32x6xf32>
    %cst_19 = arith.constant dense<0.000000e+00> : vector<2x6xf32>
    %55 = vector.multi_reduction <add>, %54, %cst_19 [1] : vector<2x32x6xf32> to vector<2x6xf32>
    %56 = vector.shape_cast %55 : vector<2x6xf32> to vector<2x1x6xf32>
    %57 = math.sqrt %56 : vector<2x1x6xf32>
    %cst_20 = arith.constant 9.99999993E-9 : f32
    %58 = vector.broadcast %cst_20 : f32 to vector<2x1x6xf32>
    %59 = arith.addf %57, %58 : vector<2x1x6xf32>
    %60 = tpu.reciprocal %59 : vector<2x1x6xf32> -> vector<2x1x6xf32>
    %61 = vector.broadcast %53 : vector<2x8x1xf32> to vector<2x8x32xf32>
    %62 = arith.mulf %0, %61 : vector<2x8x32xf32>
    %63 = vector.broadcast %60 : vector<2x1x6xf32> to vector<2x32x6xf32>
    %64 = arith.mulf %1, %63 : vector<2x32x6xf32>
    "tpu.trace_start"() <{level = 10 : i32, message = "bmd,bdn->bmn"}> : () -> ()
    %cst_21 = arith.constant dense<0.000000e+00> : vector<2x8x6xf32>
    %65 = tpu.matmul %62, %64, %cst_21 {dimension_numbers = #tpu.dot_dimension_numbers<[2], [1], [1], [2], [0, 0, 0, 1, 1, 2], [0], [0]>} : vector<2x8x32xf32>, vector<2x32x6xf32>, vector<2x8x6xf32> -> vector<2x8x6xf32>
    "tpu.trace_stop"() : () -> ()
    %66 = arith.mulf %65, %65 : vector<2x8x6xf32>
    %cst_22 = arith.constant dense<0.000000e+00> : vector<2x8xf32>
    %67 = vector.multi_reduction <add>, %66, %cst_22 [2] : vector<2x8x6xf32> to vector<2x8xf32>
    %cst_23 = arith.constant dense<0.000000e+00> : vector<2xf32>
    %68 = vector.multi_reduction <add>, %67, %cst_23 [1] : vector<2x8xf32> to vector<2xf32>
    %69 = vector.shape_cast %68 : vector<2xf32> to vector<2x1xf32>
    %cst_24 = arith.constant dense<0.000000e+00> : vector<1xf32>
    %70 = vector.multi_reduction <add>, %69, %cst_24 [0] : vector<2x1xf32> to vector<1xf32>
    %71 = vector.shape_cast %70 : vector<1xf32> to vector<1x1xf32>
    %cst_25 = arith.constant 0.010416667 : f32
    %72 = vector.broadcast %cst_25 : f32 to vector<1x1xf32>
    %73 = arith.mulf %71, %72 : vector<1x1xf32>
    %cst_26 = arith.constant 1.000000e-01 : f32
    %74 = vector.broadcast %cst_26 : f32 to vector<1x1xf32>
    %75 = arith.mulf %74, %73 : vector<1x1xf32>
    %76 = arith.addf %46, %75 : vector<1x1xf32>
    %77 = tpu.iota {dimensions = array<i32: 1>} : vector<1x128xi32>
    %c0_i32_27 = arith.constant 0 : i32
    %78 = vector.broadcast %c0_i32_27 : i32 to vector<1x128xi32>
    %79 = arith.cmpi eq, %77, %78 : vector<1x128xi32>
    %cst_28 = arith.constant 0.000000e+00 : f32
    %80 = vector.shape_cast %46 : vector<1x1xf32> to vector<1x1xf32>
    %81 = vector.broadcast %80 : vector<1x1xf32> to vector<1x128xf32>
    %82 = vector.broadcast %cst_28 : f32 to vector<1x128xf32>
    %83 = arith.select %79, %81, %82 : vector<1x128xi1>, vector<1x128xf32>
    %c1_i32_29 = arith.constant 1 : i32
    %84 = vector.broadcast %c1_i32_29 : i32 to vector<1x128xi32>
    %85 = arith.cmpi eq, %77, %84 : vector<1x128xi32>
    %cst_30 = arith.constant 0.000000e+00 : f32
    %86 = vector.shape_cast %73 : vector<1x1xf32> to vector<1x1xf32>
    %87 = vector.broadcast %86 : vector<1x1xf32> to vector<1x128xf32>
    %88 = vector.broadcast %cst_30 : f32 to vector<1x128xf32>
    %89 = arith.select %85, %87, %88 : vector<1x128xi1>, vector<1x128xf32>
    %90 = arith.addf %83, %89 : vector<1x128xf32>
    %c2_i32 = arith.constant 2 : i32
    %91 = vector.broadcast %c2_i32 : i32 to vector<1x128xi32>
    %92 = arith.cmpi eq, %77, %91 : vector<1x128xi32>
    %cst_31 = arith.constant 0.000000e+00 : f32
    %93 = vector.shape_cast %76 : vector<1x1xf32> to vector<1x1xf32>
    %94 = vector.broadcast %93 : vector<1x1xf32> to vector<1x128xf32>
    %95 = vector.broadcast %cst_31 : f32 to vector<1x128xf32>
    %96 = arith.select %92, %94, %95 : vector<1x128xi1>, vector<1x128xf32>
    %97 = arith.addf %90, %96 : vector<1x128xf32>
    %98 = vector.extract_strided_slice %14 {offsets = [0, 0], sizes = [1, 1], strides = [1, 1]} : vector<2x4xf32> to vector<1x1xf32>
    %c8_i32 = arith.constant 8 : i32
    %99 = vector.broadcast %c8_i32 : i32 to vector<1x128xi32>
    %100 = arith.cmpi eq, %77, %99 : vector<1x128xi32>
    %101 = vector.shape_cast %98 : vector<1x1xf32> to vector<1x1xf32>
    %102 = vector.broadcast %101 : vector<1x1xf32> to vector<1x128xf32>
    %103 = arith.select %100, %102, %97 : vector<1x128xi1>, vector<1x128xf32>
    %104 = vector.extract_strided_slice %14 {offsets = [0, 1], sizes = [1, 1], strides = [1, 1]} : vector<2x4xf32> to vector<1x1xf32>
    %c9_i32 = arith.constant 9 : i32
    %105 = vector.broadcast %c9_i32 : i32 to vector<1x128xi32>
    %106 = arith.cmpi eq, %77, %105 : vector<1x128xi32>
    %107 = vector.shape_cast %104 : vector<1x1xf32> to vector<1x1xf32>
    %108 = vector.broadcast %107 : vector<1x1xf32> to vector<1x128xf32>
    %109 = arith.select %106, %108, %103 : vector<1x128xi1>, vector<1x128xf32>
    %110 = vector.extract_strided_slice %14 {offsets = [0, 2], sizes = [1, 1], strides = [1, 1]} : vector<2x4xf32> to vector<1x1xf32>
    %c10_i32 = arith.constant 10 : i32
    %111 = vector.broadcast %c10_i32 : i32 to vector<1x128xi32>
    %112 = arith.cmpi eq, %77, %111 : vector<1x128xi32>
    %113 = vector.shape_cast %110 : vector<1x1xf32> to vector<1x1xf32>
    %114 = vector.broadcast %113 : vector<1x1xf32> to vector<1x128xf32>
    %115 = arith.select %112, %114, %109 : vector<1x128xi1>, vector<1x128xf32>
    %116 = vector.extract_strided_slice %14 {offsets = [0, 3], sizes = [1, 1], strides = [1, 1]} : vector<2x4xf32> to vector<1x1xf32>
    %c11_i32 = arith.constant 11 : i32
    %117 = vector.broadcast %c11_i32 : i32 to vector<1x128xi32>
    %118 = arith.cmpi eq, %77, %117 : vector<1x128xi32>
    %119 = vector.shape_cast %116 : vector<1x1xf32> to vector<1x1xf32>
    %120 = vector.broadcast %119 : vector<1x1xf32> to vector<1x128xf32>
    %121 = arith.select %118, %120, %115 : vector<1x128xi1>, vector<1x128xf32>
    %122 = vector.extract_strided_slice %14 {offsets = [1, 0], sizes = [1, 1], strides = [1, 1]} : vector<2x4xf32> to vector<1x1xf32>
    %c12_i32 = arith.constant 12 : i32
    %123 = vector.broadcast %c12_i32 : i32 to vector<1x128xi32>
    %124 = arith.cmpi eq, %77, %123 : vector<1x128xi32>
    %125 = vector.shape_cast %122 : vector<1x1xf32> to vector<1x1xf32>
    %126 = vector.broadcast %125 : vector<1x1xf32> to vector<1x128xf32>
    %127 = arith.select %124, %126, %121 : vector<1x128xi1>, vector<1x128xf32>
    %128 = vector.extract_strided_slice %14 {offsets = [1, 1], sizes = [1, 1], strides = [1, 1]} : vector<2x4xf32> to vector<1x1xf32>
    %c13_i32 = arith.constant 13 : i32
    %129 = vector.broadcast %c13_i32 : i32 to vector<1x128xi32>
    %130 = arith.cmpi eq, %77, %129 : vector<1x128xi32>
    %131 = vector.shape_cast %128 : vector<1x1xf32> to vector<1x1xf32>
    %132 = vector.broadcast %131 : vector<1x1xf32> to vector<1x128xf32>
    %133 = arith.select %130, %132, %127 : vector<1x128xi1>, vector<1x128xf32>
    %134 = vector.extract_strided_slice %14 {offsets = [1, 2], sizes = [1, 1], strides = [1, 1]} : vector<2x4xf32> to vector<1x1xf32>
    %c14_i32 = arith.constant 14 : i32
    %135 = vector.broadcast %c14_i32 : i32 to vector<1x128xi32>
    %136 = arith.cmpi eq, %77, %135 : vector<1x128xi32>
    %137 = vector.shape_cast %134 : vector<1x1xf32> to vector<1x1xf32>
    %138 = vector.broadcast %137 : vector<1x1xf32> to vector<1x128xf32>
    %139 = arith.select %136, %138, %133 : vector<1x128xi1>, vector<1x128xf32>
    %140 = vector.extract_strided_slice %14 {offsets = [1, 3], sizes = [1, 1], strides = [1, 1]} : vector<2x4xf32> to vector<1x1xf32>
    %c15_i32 = arith.constant 15 : i32
    %141 = vector.broadcast %c15_i32 : i32 to vector<1x128xi32>
    %142 = arith.cmpi eq, %77, %141 : vector<1x128xi32>
    %143 = vector.shape_cast %140 : vector<1x1xf32> to vector<1x1xf32>
    %144 = vector.broadcast %143 : vector<1x1xf32> to vector<1x128xf32>
    %145 = arith.select %142, %144, %139 : vector<1x128xi1>, vector<1x128xf32>
    %c0_32 = arith.constant 0 : index
    %c0_33 = arith.constant 0 : index
    %146 = vector.load %arg4[%c0_32, %c0_33] : memref<1x128xf32, #tpu.memory_space<vmem>>, vector<1x128xf32>
    tpu.vector_store %arg4[%c0_32, %c0_33], %145 {strides = array<i32>} : memref<1x128xf32, #tpu.memory_space<vmem>>, vector<1x128xf32>,
    return
  }
}

</mosaic_0001>

<bundles_post_ra>
// kernel: tpu_custom_call.1
= control target key start
LH: loop header
LB: loop body
LE: loop exit
PB: predicated region body
PF: predicated region fallthrough
CT: control target
= control target key end

     0   :  { %9 = vsyncpa [#allocation4], 0  ;;  %s779_s0 = inlined_call_operand.vmem [shape: f32[2,8,32], index: 0, kind: input, shape index: {}]   ;;  %s780_s1 = inlined_call_operand.vmem [shape: f32[2,32,6], index: 1, kind: input, shape index: {}]   ;;  %s781_s2 = inlined_call_operand.vmem [shape: s32[2], index: 2, kind: input, shape index: {}]   ;;  %s782_s3 = inlined_call_operand.vmem [shape: f32[5,32], index: 3, kind: input, shape index: {}]   ;;  %s783_s4 = inlined_call_operand.hbm [shape: f32[1,128], index: 4, kind: output, shape index: {}]  }
   0x1   :  { %10 = vsyncpa [#allocation3], 0  ;;  %s21_s17 = sshll.u32 %s781_s2, 4  ;;  %s22_s17 = int_to_ptr.vmem [resolvable:$true] %s21_s17 }
   0x2   :  { %s568_s18 = scalar_lea.vmem %s22_s17, 16  ;;  %p573_p1 = scmp.lt.s32.totalorder %s22_s17, %s22_s17 }
   0x3   :  { %p569_p0 = scmp.ne.s32.totalorder %s22_s17, %s568_s18  ;;  %p574_p2 = scmp.lt.s32.totalorder %s568_s18, %s568_s18 }
   0x5   :  { %p575_p3 = por %p574_p2, %p573_p1 }
   0x7   :  { %p576_p4 = pnand %p575_p3, %p569_p0 }
   0x9   :  { %579 = shalt.err (!%p576_p4)
}
   0xa   :  { %s604_s19 = smov [#allocation2]  }
   0xb   :  { %24 = dma.vmem_to_smem %s22_s17, 16, %s604_s19, [#allocation4]  }
   0xc   :  { %600 = dma.done.wait [#allocation4], 16  }
   0xd   :  { %601 = vsyncadd [#allocation4], 4294967280 }
   0xe   :  { %30 = sfence }
   0xf   :  { %v640_v0 = vld [vmem:[%s779_s0] sm:$0xff]  ;;  %vm43_vm0 = vcmask 261120   ;;  %v645_v1 = vld [vmem:[%s779_s0 + $0x8] sm:$0xff]  ;;  %v668_v10 = vld [vmem:[%s780_s1 + $0x10] sm:$0xff]  ;;  %vm205_vm1 = vcmask 48128   ;;  %vm62_vm2 = vcmask 257024  }
  0x10   :  { %v171_v2 = vmul.f32 %v640_v0, %v640_v0  ;;  %v44_v3 = vsel %vm43_vm0, %v640_v0, 0.0  ;;  %v51_v4 = vsel %vm43_vm0, %v645_v1, 0.0  ;;  %v172_v5 = vmul.f32 %v645_v1, %v645_v1  ;;  %v658_v6 = vld [vmem:[%s780_s1] sm:$0xff]  ;;  %v663_v7 = vld [vmem:[%s780_s1 + $0x8] sm:$0xff]  ;;  %v673_v11 = vld [vmem:[%s780_s1 + $0x18] sm:$0xff]  ;;  %s504_s15 = sld [smem:[#allocation2 + $0x1]] }
  0x11   :  { %v45_v8 = vrot.slane %v44_v3, 4  ;;  %v52_v9 = vrot.slane %v51_v4, 4  ;;  %v197_v12 = vmul.f32 %v658_v6, %v658_v6  ;;  %v198_v13 = vmul.f32 %v663_v7, %v663_v7  ;;  %v682_v14 = vld [vmem:[%s780_s1 + $0x20] sm:$0xff]  ;;  %v692_v18 = vld [vmem:[%s780_s1 + $0x28] sm:$0xff]  ;;  %v697_v21 = vld [vmem:[%s780_s1 + $0x30] sm:$0xff]  ;;  %s608_s16 = smov [#allocation5]  }
  0x12   :  { %v173_v15 = vsel %vm43_vm0, %v171_v2, 0.0  ;;  %v199_v16 = vmul.f32 %v668_v10, %v668_v10  ;;  %v200_v17 = vmul.f32 %v673_v11, %v673_v11  ;;  %v702_v22 = vld [vmem:[%s780_s1 + $0x38] sm:$0xff]  ;;  %v201_v23 = vmul.f32 %v682_v14, %v682_v14  ;;  %v41_v50 = vld [vmem:[%s782_s3] sm:$0xf]  ;;  %s494_s17 = sshll.u32 %s608_s16, 4  ;;  %s495_s17 = int_to_ptr.vmem [resolvable:$true] %s494_s17 }
  0x13   :  { %174 = vadd.xlane.f32.xlu0 %v173_v15  ;;  %v46_v19 = vadd.f32 %v45_v8, %v44_v3  ;;  %v53_v20 = vadd.f32 %v52_v9, %v51_v4  ;;  %v176_v24 = vsel %vm43_vm0, %v172_v5, 0.0  ;;  %v206_v25 = vsel %vm205_vm1, %v197_v12, 0.0  ;;  %v503_v9 = vld [vmem:[%s782_s3 + $0x4] ss:$0 sm:$0xff]  ;;  %s85_s3 = sld [smem:[#allocation2]]  ;;  %s580_s18 = scalar_lea.vmem %s495_s17, 16 }
  0x14   :  { %v207_v26 = vsel %vm205_vm1, %v198_v13, 0.0  ;;  %v209_v27 = vsel %vm205_vm1, %v199_v16, 0.0  ;;  %v202_v31 = vmul.f32 %v692_v18, %v692_v18  ;;  %v211_v32 = vsel %vm205_vm1, %v200_v17, 0.0  ;;  %p581_p5 = scmp.ne.s32.totalorder %s495_s17, %s580_s18  ;;  %s584_s19 = scalar_lea.vmem %s495_s17, 32 }
  0x15   :  { %v47_v28 = vrot.slane %v46_v19, 2  ;;  %v54_v29 = vrot.slane %v53_v20, 2  ;;  %v208_v30 = vadd.f32 %v207_v26, %v206_v25  ;;  %v203_v33 = vmul.f32 %v697_v21, %v697_v21  ;;  %p585_p6 = scmp.lt.s32.totalorder %s495_s17, %s495_s17  ;;  %p586_p7 = scmp.lt.s32.totalorder %s584_s19, %s580_s18 }
  0x16   :  { %v204_v34 = vmul.f32 %v702_v22, %v702_v22  ;;  %v219_v35 = vsel %vm205_vm1, %v201_v23, 0.0  ;;  %v220_v39 = vsel %vm205_vm1, %v202_v31, 0.0  ;;  %v605_v12 = vmov 0  }
  0x17   :  { %177 = vadd.xlane.f32.xlu0 %v176_v24  ;;  %v48_v36 = vadd.f32 %v47_v28, %v46_v19  ;;  %v55_v37 = vadd.f32 %v54_v29, %v53_v20  ;;  %v210_v38 = vadd.f32 %v209_v27, %v208_v30  ;;  %v221_v40 = vadd.f32 %v220_v39, %v219_v35  ;;  %p587_p8 = por %p586_p7, %p585_p6 }
  0x18   :  { %v222_v41 = vsel %vm205_vm1, %v203_v33, 0.0  ;;  %v224_v45 = vsel %vm205_vm1, %v204_v34, 0.0  ;;  %544 = vset.pattern.permute.xlu1 %v605_v12  ;;  %545 = vset.pattern.permute.xlu0 %v605_v12  ;;  %v606_v17 = vmov 0.0   ;;  %vm607_vm6 = vmmov 0  }
  0x19   :  { %v49_v42 = vrot.slane %v48_v36, 1  ;;  %v56_v43 = vrot.slane %v55_v37, 1  ;;  %v212_v44 = vadd.f32 %v211_v32, %v210_v38  ;;  %v223_v46 = vadd.f32 %v222_v41, %v221_v40  ;;  %517 = vmatprep.subr.mxu0 %v606_v17  ;;  %528 = vmatprep.subr.mxu1 %v606_v17  ;;  %p588_p9 = pnand %p587_p8, %p581_p5 }
  0x1a   :  { %525 = vmatprep.mubr.msk.f32.mxu0 %vm607_vm6, %v606_v17  ;;  %536 = vmatprep.mubr.msk.f32.mxu1 %vm607_vm6, %v606_v17  ;;  %vm109_vm12 = vcmask 1041409   ;;  %vm112_vm13 = vcmask 25600  }
  0x1b   :  { %v50_v47 = vadd.f32 %v49_v42, %v48_v36  ;;  %v57_v48 = vadd.f32 %v56_v43, %v55_v37  ;;  %v213_v49 = vrot.slane %v212_v44, 4  ;;  %v225_v51 = vadd.f32 %v224_v45, %v223_v46 }
  0x1d   :  { %v58_v52 = vmul.f32 0.125, %v50_v47  ;;  %v59_v53 = vmul.f32 0.125, %v57_v48  ;;  %v214_v54 = vadd.f32 %v213_v49, %v212_v44  ;;  %v226_v55 = vrot.slane %v225_v51, 4 }
  0x1f   :  { %v60_v56 = vmul.f32 %v58_v52, %v41_v50  ;;  %v61_v57 = vmul.f32 %v59_v53, %v41_v50  ;;  %v215_v58 = vrot.slane %v214_v54, 2  ;;  %v227_v59 = vadd.f32 %v226_v55, %v225_v51 }
  0x20   :  { %v80_v55 = vlaneseq }
  0x21   :  { %v63_v60 = vsel %vm62_vm2, %v60_v56, 0.0  ;;  %v216_v61 = vadd.f32 %v215_v58, %v214_v54  ;;  %v228_v62 = vrot.slane %v227_v59, 2  ;;  %v66_v63 = vsel %vm62_vm2, %v61_v57, 0.0 }
  0x22   :  { %64 = vadd.xlane.f32.xlu1 %v63_v60  ;;  %v739_v56 = vand.u32 127, %v80_v55  ;;  %v83_v57 = vshrl.u32 %v80_v55, 7  ;;  %vm426_vm2 = vcmask 58368  }
  0x23   :  { %v217_v2 = vrot.slane %v216_v61, 1  ;;  %v229_v3 = vadd.f32 %v228_v62, %v227_v59 }
  0x24   :  { %v103_v59 = vsub.s32 %v739_v56, %v83_v57  ;;  %v123_v12 = vsub.s32 1, %v83_v57  ;;  %vm84_vm14 = vcmp.eq.s32.totalorder %v83_v57, 0  ;;  %vm88_vm15 = vcmp.eq.s32.totalorder %v83_v57, 1 }
  0x25   :  { %v218_v4 = vadd.f32 %v217_v2, %v216_v61  ;;  %v230_v5 = vrot.slane %v229_v3, 1  ;;  %vm448_vm6 = vcmp.eq.s32.totalorder %v739_v56, 8 }
  0x26   :  { %67 = vadd.xlane.f32.xlu1 %v66_v63 }
  0x27   :  { %546 = vrsqrt.f32 %v218_v4  ;;  %v231_v8 = vadd.f32 %v230_v5, %v229_v3  ;;  %vm234_vm3 = vcmp.eq.f32.partialorder %v218_v4, inf  ;;  %v237_v15 = vand.u32 2147483648, %v218_v4 }
  0x28   :  { %vm236_vm4 = vcmp.eq.f32.partialorder %v218_v4, 0.0 }
  0x29   :  { %548 = vrsqrt.f32 %v231_v8  ;;  %vm241_vm5 = vcmp.eq.f32.partialorder %v231_v8, inf  ;;  %v244_v23 = vand.u32 2147483648, %v231_v8  ;;  %vm243_vm7 = vcmp.eq.f32.partialorder %v231_v8, 0.0 }
  0x2d   :  { %75 = vbcast.lane.b32.xlu0 %v503_v9, 256  ;;  %v119_v9 = vsub.s32 0, %v83_v57 }
  0x34   :  { %v547_v13 = vpop.eup %546 }
  0x35   :  { %v233_v16 = vmul.f32 %v547_v13, %v218_v4 }
  0x36   :  { %v549_v19 = vpop.eup %548 }
  0x37   :  { %v235_v20 = vsel %vm234_vm3, %v218_v4, %v233_v16  ;;  %v240_v25 = vmul.f32 %v549_v19, %v231_v8  ;;  %vm442_vm3 = vcmp.eq.s32.totalorder %v739_v56, 1 }
  0x38   :  { %v238_v24 = vsel %vm236_vm4, %v237_v15, %v235_v20  ;;  %vm440_vm4 = vcmp.eq.s32.totalorder %v739_v56, 0 }
  0x39   :  { %v246_v26 = vadd.f32 1e-08, %v238_v24  ;;  %v242_v27 = vsel %vm241_vm5, %v231_v8, %v240_v25  ;;  %vm445_vm5 = vcmp.eq.s32.totalorder %v739_v56, 2 }
  0x3a   :  { %v245_v28 = vsel %vm243_vm7, %v244_v23, %v242_v27  ;;  %vm451_vm7 = vcmp.eq.s32.totalorder %v739_v56, 9 }
  0x3b   :  { %550 = vrcp.f32 %v246_v26  ;;  %v247_v29 = vadd.f32 1e-08, %v245_v28  ;;  %v86_v26 = vstv %s85_s3  ;;  %v90_v28 = vstv %s504_s15 }
  0x3c   :  { %v87_v27 = vsel %vm84_vm14, %v86_v26, 4294967295 }
  0x3d   :  { %552 = vrcp.f32 %v247_v29  ;;  %v91_v29 = vsel %vm88_vm15, %v90_v28, %v87_v27 }
  0x48   :  { %v551_v30 = vpop.eup %550 }
  0x49   :  { %v255_v31 = vmul.f32 %v551_v30, %v673_v11  ;;  %v254_v32 = vmul.f32 %v551_v30, %v668_v10  ;;  %v253_v34 = vmul.f32 %v551_v30, %v663_v7  ;;  %v252_v37 = vmul.f32 %v551_v30, %v658_v6 }
  0x4a   :  { %v553_v33 = vpop.eup %552 }
  0x4b   :  { %518 = vmatpush3.msra.mxu0 %v255_v31  ;;  %v259_v35 = vmul.f32 %v553_v33, %v702_v22  ;;  %v258_v36 = vmul.f32 %v553_v33, %v697_v21  ;;  %v257_v38 = vmul.f32 %v553_v33, %v692_v18  ;;  %v256_v10 = vmul.f32 %v553_v33, %v682_v14 }
  0x4c   :  { %519 = vmatprep.subr.mxu0 %v606_v17 }
  0x4d   :  { %520 = vmatpush3.msra.mxu0 %v254_v32  ;;  %529 = vmatpush3.msra.mxu1 %v259_v35 }
  0x4e   :  { %521 = vmatprep.subr.mxu0 %v606_v17  ;;  %530 = vmatprep.subr.mxu1 %v606_v17 }
  0x4f   :  { %522 = vmatpush3.msra.mxu0 %v253_v34  ;;  %531 = vmatpush3.msra.mxu1 %v258_v36 }
  0x50   :  { %523 = vmatprep.subr.mxu0 %v606_v17  ;;  %532 = vmatprep.subr.mxu1 %v606_v17 }
  0x51   :  { %524 = vmatpush3.msra.mxu0 %v252_v37  ;;  %533 = vmatpush3.msra.mxu1 %v257_v38 }
  0x52   :  { %534 = vmatprep.subr.mxu1 %v606_v17 }
  0x53   :  { %535 = vmatpush3.msra.mxu1 %v256_v10 }
  0x9c   :  { %v175_v7 = vpop.xlane.xlu0 %174 }
  0x9d   :  { %554 = vrsqrt.f32 %v175_v7  ;;  %vm181_vm8 = vcmp.eq.f32.partialorder %v175_v7, inf  ;;  %v184_v18 = vand.u32 2147483648, %v175_v7  ;;  %vm183_vm9 = vcmp.eq.f32.partialorder %v175_v7, 0.0 }
  0xa0   :  { %v178_v11 = vpop.xlane.xlu0 %177 }
  0xa1   :  { %556 = vrsqrt.f32 %v178_v11  ;;  %vm188_vm10 = vcmp.eq.f32.partialorder %v178_v11, inf  ;;  %v191_v46 = vand.u32 2147483648, %v178_v11  ;;  %vm190_vm11 = vcmp.eq.f32.partialorder %v178_v11, 0.0 }
  0xa4   :  { %v76_v6 = vpop.permute.xlu0 %75 }
  0xaa   :  { %v555_v21 = vpop.eup %554 }
  0xab   :  { %v180_v22 = vmul.f32 %v555_v21, %v175_v7  ;;  %v65_v39 = vpop.xlane.xlu1 %64 }
  0xac   :  { %v78_v40 = vadd.f32 %v76_v6, %v65_v39 }
  0xad   :  { %v182_v41 = vsel %vm181_vm8, %v175_v7, %v180_v22  ;;  %vm456_vm8 = vcmp.eq.s32.totalorder %v739_v56, 10 }
  0xae   :  { %v557_v42 = vpop.eup %556  ;;  %v185_v14 = vsel %vm183_vm9, %v184_v18, %v182_v41  ;;  %96 = vperm.xlu1 %544, %v78_v40   ;;  %vm461_vm9 = vcmp.eq.s32.totalorder %v739_v56, 11 }
  0xaf   :  { %v193_v43 = vadd.f32 1e-08, %v185_v14  ;;  %v187_v44 = vmul.f32 %v557_v42, %v178_v11  ;;  %v68_v45 = vpop.xlane.xlu1 %67 }
  0xb0   :  { %v79_v47 = vadd.f32 %v76_v6, %v68_v45 }
  0xb1   :  { %558 = vrcp.f32 %v193_v43  ;;  %v189_v48 = vsel %vm188_vm10, %v178_v11, %v187_v44  ;;  %vm466_vm10 = vcmp.eq.s32.totalorder %v739_v56, 12 }
  0xb2   :  { %v192_v49 = vsel %vm190_vm11, %v191_v46, %v189_v48  ;;  %99 = vperm.xlu1 %544, %v79_v47   ;;  %vm472_vm11 = vcmp.eq.s32.totalorder %v739_v56, 13 }
  0xb3   :  { %v194_v50 = vadd.f32 1e-08, %v192_v49 }
  0xb5   :  { %560 = vrcp.f32 %v194_v50 }
  0xbe   :  { %v559_v51 = vpop.eup %558 }
  0xbf   :  { %v250_v52 = vmul.f32 %v559_v51, %v640_v0 }
  0xc1   :  { %526 = vmatmul.mubr.msk.f32.vlgmr.msra.gmra.mxu0 %vm43_vm0, %v250_v52 }
  0xc2   :  { %v561_v53 = vpop.eup %560 }
  0xc3   :  { %v251_v54 = vmul.f32 %v561_v53, %v645_v1 }
  0xc5   :  { %537 = vmatmul.mubr.msk.f32.vlgmr.msra.gmra.mxu1 %vm43_vm0, %v251_v54  ;;  %vm92_vm0 = vcmp.eq.s32.totalorder %v739_v56, %v91_v29 }
 0x129   :  { %v741_v58 = vpop.permute.xlu1 %96 }
 0x12a   :  { %v104_v0 = vrot.slane %v741_v58, %v103_v59 }
 0x12d   :  { %v744_v60 = vpop.permute.xlu1 %99 }
 0x12e   :  { %v108_v61 = vrot.slane %v744_v60, %v103_v59 }
 0x130   :  { %v110_v1 = vsel %vm109_vm12, %v108_v61, %v104_v0 }
 0x131   :  { %v113_v62 = vsel %vm112_vm13, %v110_v1, -inf  ;;  %v157_v32 = vsel %vm92_vm0, %v110_v1, 0.0 }
 0x132   :  { %114 = vmax.xlane.f32.xlu1 %v113_v62  ;;  %v158_v33 = vsel %vm112_vm13, %v157_v32, 0.0 }
 0x181   :  { %v329_v63 = vpop.f32.mrf.mxu0 }
 0x182   :  { %v406_v30 = vmul.f32 %v329_v63, %v329_v63 }
 0x183   :  { %v527_v2 = vpop.f32.mrf.mxu0 }
 0x184   :  { %v408_v31 = vsel %vm205_vm1, %v406_v30, 0.0 }
 0x185   :  { %v402_v3 = vpop.f32.mrf.mxu1 }
 0x186   :  { %v407_v4 = vmul.f32 %v402_v3, %v402_v3 }
 0x187   :  { %v538_v5 = vpop.f32.mrf.mxu1 }
 0x188   :  { %v411_v8 = vsel %vm205_vm1, %v407_v4, 0.0  ;;  %vm162_vm1 = vcmask 1041408  }
 0x189   :  { %412 = vadd.xlane.f32.xlu1 %v411_v8 }
 0x1bb   :  { %v115_v13 = vpop.xlane.xlu1 %114 }
 0x1bc   :  { %v120_v15 = vrot.slane %v115_v13, %v119_v9  ;;  %v124_v16 = vrot.slane %v115_v13, %v123_v12 }
 0x1be   :  { %v127_v17 = vsub.f32 %v78_v40, %v120_v15  ;;  %v128_v19 = vsub.f32 %v79_v47, %v124_v16 }
 0x1c0   :  { %v129_v20 = vmul.f32 1.442695, %v127_v17  ;;  %v131_v23 = vmul.f32 1.442695, %v128_v19 }
 0x1c2   :  { %562 = vpow2.f32 %v129_v20 }
 0x1c3   :  { %564 = vpow2.f32 %v131_v23 }
 0x1cf   :  { %v563_v24 = vpop.eup %562 }
 0x1d0   :  { %136 = vperm.xlu0 %545, %v563_v24   ;;  %v565_v25 = vpop.eup %564 }
 0x1d4   :  { %139 = vperm.xlu0 %545, %v565_v25  }
 0x1f3   :  { %409 = vadd.xlane.f32.xlu0 %v408_v31 }
 0x1f7   :  { %159 = vadd.xlane.f32.xlu0 %v158_v33 }
 0x212   :  { %v413_v7 = vpop.xlane.xlu1 %412 }
 0x213   :  { %v423_v6 = vrot.slane %v413_v7, %v103_v59 }
 0x24b   :  { %v137_v34 = vpop.permute.xlu0 %136 }
 0x24c   :  { %v144_v36 = vrot.slane %v137_v34, %v103_v59 }
 0x24f   :  { %v140_v35 = vpop.permute.xlu0 %139 }
 0x250   :  { %v148_v37 = vrot.slane %v140_v35, %v103_v59 }
 0x252   :  { %v149_v38 = vsel %vm109_vm12, %v148_v37, %v144_v36 }
 0x253   :  { %v151_v10 = vsel %vm112_vm13, %v149_v38, 0.0  ;;  %vm482_vm13 = vcmp.eq.s32.totalorder %v739_v56, 15 }
 0x254   :  { %152 = vadd.xlane.f32.xlu1 %v151_v10 }
 0x27c   :  { %v410_v11 = vpop.xlane.xlu0 %409 }
 0x27d   :  { %v419_v21 = vrot.slane %v410_v11, %v103_v59 }
 0x27f   :  { %v424_v22 = vsel %vm109_vm12, %v423_v6, %v419_v21  ;;  %vm477_vm12 = vcmp.eq.s32.totalorder %v739_v56, 14 }
 0x280   :  { %v427_v39 = vsel %vm426_vm2, %v424_v22, 0.0  ;;  %v160_v14 = vpop.xlane.xlu0 %159 }
 0x281   :  { %428 = vadd.xlane.f32.xlu1 %v427_v39 }
 0x2dd   :  { %v153_v18 = vpop.xlane.xlu1 %152 }
 0x2de   :  { %566 = vlog2.f32 %v153_v18 }
 0x2eb   :  { %v567_v40 = vpop.eup %566 }
 0x2ec   :  { %v155_v41 = vmul.f32 0.6931472, %v567_v40 }
 0x2ee   :  { %v156_v42 = vadd.f32 %v155_v41, %v115_v13 }
 0x2f0   :  { %v161_v43 = vsub.f32 %v156_v42, %v160_v14 }
 0x2f2   :  { %v163_v44 = vsel %vm162_vm1, %v161_v43, 0.0 }
 0x2f3   :  { %v164_v45 = vrot.slane %v163_v44, 4 }
 0x2f5   :  { %v165_v46 = vadd.f32 %v164_v45, %v163_v44 }
 0x2f7   :  { %v166_v47 = vrot.slane %v165_v46, 2 }
 0x2f9   :  { %v167_v50 = vadd.f32 %v166_v47, %v165_v46 }
 0x2fb   :  { %v168_v53 = vrot.slane %v167_v50, 1 }
 0x2fd   :  { %v169_v57 = vadd.f32 %v168_v53, %v167_v50 }
 0x2ff   :  { %v170_v61 = vmul.f32 0.5, %v169_v57 }
 0x301   :  { %v441_v2 = vsel %vm440_vm4, %v170_v61, 0.0 }
 0x30a   :  { %v429_v48 = vpop.xlane.xlu1 %428 }
 0x30b   :  { %v430_v49 = vsel %vm162_vm1, %v429_v48, 0.0 }
 0x30c   :  { %v431_v51 = vrot.slane %v430_v49, 4 }
 0x30e   :  { %v432_v52 = vadd.f32 %v431_v51, %v430_v49 }
 0x310   :  { %v433_v54 = vrot.slane %v432_v52, 2 }
 0x312   :  { %v434_v55 = vadd.f32 %v433_v54, %v432_v52 }
 0x314   :  { %v435_v59 = vrot.slane %v434_v55, 1 }
 0x316   :  { %v436_v0 = vadd.f32 %v435_v59, %v434_v55 }
 0x318   :  { %v437_v1 = vmul.f32 0.010416667, %v436_v0 }
 0x31a   :  { %v438_v62 = vmul.f32 0.1, %v437_v1  ;;  %v443_v63 = vsel %vm442_vm3, %v437_v1, 0.0 }
 0x31b   :  { %v444_v4 = vadd.f32 %v443_v63, %v441_v2 }
 0x31c   :  { %v439_v3 = vadd.f32 %v438_v62, %v170_v61 }
 0x31e   :  { %v446_v5 = vsel %vm445_vm5, %v439_v3, 0.0 }
 0x31f   :  { %v447_v8 = vadd.f32 %v446_v5, %v444_v4 }
 0x321   :  { %v450_v9 = vsel %vm448_vm6, %v741_v58, %v447_v8 }
 0x322   :  { %v453_v12 = vrot.slane %v450_v9, 7 }
 0x324   :  { %v455_v13 = vsel %vm451_vm7, %v741_v58, %v453_v12 }
 0x325   :  { %v458_v15 = vrot.slane %v455_v13, 7 }
 0x327   :  { %v460_v16 = vsel %vm456_vm8, %v741_v58, %v458_v15 }
 0x328   :  { %v463_v17 = vrot.slane %v460_v16, 7 }
 0x32a   :  { %v465_v19 = vsel %vm461_vm9, %v741_v58, %v463_v17 }
 0x32b   :  { %v469_v20 = vrot.slane %v465_v19, 3 }
 0x32d   :  { %v471_v23 = vsel %vm466_vm10, %v744_v60, %v469_v20 }
 0x32e   :  { %v474_v24 = vrot.slane %v471_v23, 7 }
 0x330   :  { %v476_v25 = vsel %vm472_vm11, %v744_v60, %v474_v24 }
 0x331   :  { %v479_v26 = vrot.slane %v476_v25, 7 }
 0x333   :  { %v481_v27 = vsel %vm477_vm12, %v744_v60, %v479_v26 }
 0x334   :  { %v484_v58 = vrot.slane %v481_v27, 7 }
 0x336   :  { %v486_v28 = vsel %vm482_vm13, %v744_v60, %v484_v58 }
 0x337   :  { %487 = vst [vmem:[#allocation5 - $0x3] sm:$0x8] %v486_v28 }
 0x338   :  { %591 = shalt.err (!%p588_p9)
}
 0x339   :  { %497 = dma.vmem_to_hbm [thread:$0]  %s495_s17, 16, %s783_s4, [#allocation3]  }
 0x33a   :  { %602 = dma.done.wait [#allocation3], 16  }
 0x33b   :  { %603 = vsyncadd [#allocation3], 4294967280 }
 0x33c   :  { %501 = vsyncpa [#allocation3], 1 }
 0x33d   :  { %502 = vsyncpa [#allocation4], 1 }

</bundles_post_ra>
